<compile_context>
chip_gen: v7x
topology: tpu7x:2x2x1
jax: 0.10.0
libtpu: 0.0.40
codegen_flags: <defaults>
</compile_context>

<pallas_src>
import jax
import jax.numpy as jnp
from jax.experimental import pallas as pl
from jax.experimental.pallas import tpu as pltpu


_SMALL_BATCH_MAX = 1024  # below this, one no-grid kernel beats the tiled pipeline


def _round_up(n, m):
    return ((n + m - 1) // m) * m


def _default_tile_batch():
    """Per-generation max batch tile (lane count) for the tiled path."""
    try:
        kind = jax.devices()[0].device_kind.lower()
    except Exception:
        kind = ""
    if ("v6" in kind) or ("7" in kind):
        # v6e / v7x: ~12 MiB double-buffered footprint, fits 32 MiB scoped VMEM.
        return 65536
    # v5e (16 MiB scoped-VMEM default) and unknown chips: stay conservative.
    return 32768


# ---------------------------------------------------------------------------
# Large-batch kernel: feature-major, batch on the 128-wide lane axis.
#   h^T = W1 @ x^T (MXU, f32 acc); layer 2 (width 1) = VPU mul + sublane reduce.
# ---------------------------------------------------------------------------
def _toy_mlp_kernel(xT_ref, w1_ref, b1_ref, w2_ref, b2_ref, o_ref):
    h = jnp.dot(w1_ref[...], xT_ref[...], preferred_element_type=jnp.float32)  # (10, TB)
    # Fused bias + ReLU + layer-2 multiply + sublane reduce -> (1, TB).
    y = jnp.sum(jnp.maximum(h + b1_ref[...], 0.0) * w2_ref[...],
                axis=0, keepdims=True)
    o_ref[...] = jax.nn.sigmoid(y + b2_ref[0, 0]).astype(o_ref.dtype)  # lane-dense store


def toy_model_forward_feature_major(xT, w1, b1, w2, b2):
    """Forward pass on feature-major activations.

    xT: (10, B) f32; w1: (10, 10) [out, in]; b1: (10,); w2: (1, 10); b2: (1,).
    Returns (1, B) f32.
    """
    F, B = xT.shape
    out_f = w1.shape[0]

    tb_max = _default_tile_batch()
    # 128-lane aligned tile; >= 2 grid steps at large B (v7x: both TCs busy).
    tb = max(128, min(tb_max, _round_up(pl.cdiv(max(B, 1), 2), 128)))
    nb = pl.cdiv(B, tb)

    b1_col = b1.reshape(out_f, 1)   # broadcast along lanes in-kernel
    w2_col = w2.reshape(F, 1)       # == w2.T for the (1, 10) weight vector
    b2_sc = b2.reshape(1, 1)        # SMEM scalar

    return pl.pallas_call(
        _toy_mlp_kernel,
        out_shape=jax.ShapeDtypeStruct((1, B), jnp.float32),
        grid=(nb,),
        in_specs=[
            pl.BlockSpec((F, tb), lambda i: (0, i)),            # x^T tile (pipelined)
            pl.BlockSpec((out_f, F), lambda i: (0, 0)),         # W1, VMEM-resident
            pl.BlockSpec((out_f, 1), lambda i: (0, 0)),         # b1, VMEM-resident
            pl.BlockSpec((F, 1), lambda i: (0, 0)),             # w2 column, VMEM-resident
            pl.BlockSpec(memory_space=pltpu.MemorySpace.SMEM),  # b2 scalar
        ],
        out_specs=pl.BlockSpec((1, tb), lambda i: (0, i)),
        compiler_params=pltpu.CompilerParams(
            dimension_semantics=("parallel",),                  # shard batch over TCs
        ),
        cost_estimate=pl.CostEstimate(
            flops=240 * B,
            transcendentals=B,
            bytes_accessed=44 * B + 512,
        ),
    )(xT.astype(jnp.float32), w1, b1_col, w2_col, b2_sc)


# ---------------------------------------------------------------------------
# Small-batch kernel: natural (B, 10) layout, single block, no grid.
# ---------------------------------------------------------------------------
def _toy_mlp_small_kernel(x_ref, w1t_ref, b1_ref, w2_ref, b2_ref, o_ref):
    h = jnp.dot(x_ref[...], w1t_ref[...],
                preferred_element_type=jnp.float32) + b1_ref[...]        # (B, 10)
    h = jnp.maximum(h, 0.0)
    y = jnp.sum(h * w2_ref[...], axis=1, keepdims=True) + b2_ref[...]    # (B, 1)
    o_ref[...] = jax.nn.sigmoid(y).astype(o_ref.dtype)


def toy_model_forward(x, w1, b1, w2, b2):
    """Pallas-TPU forward for ToyModel.

    x: (B, 10) f32; w1: (10, 10) [out, in]; b1: (10,); w2: (1, 10); b2: (1,).
    Returns (B, 1) f32 == sigmoid(relu(x @ w1.T + b1) @ w2.T + b2).
    """
    B, F = x.shape
    out_f = w1.shape[0]

    if B <= _SMALL_BATCH_MAX:
        # Latency regime: one no-grid launch, no relayout at all.
        return pl.pallas_call(
            _toy_mlp_small_kernel,
            out_shape=jax.ShapeDtypeStruct((B, 1), jnp.float32),
        )(x.astype(jnp.float32), w1.T, b1.reshape(1, out_f),
          w2.reshape(1, F), b2.reshape(1, 1))

    # Bandwidth regime: batch on the lane axis (feature-major).
    out_1B = toy_model_forward_feature_major(x.T, w1, b1, w2, b2)
    return out_1B.T  # (1, B) -> (B, 1); degenerate transpose, no real relayout


if __name__ == "__main__":
    key = jax.random.PRNGKey(0)
    k_x, k_w1, k_b1, k_w2, k_b2, k_x2 = jax.random.split(key, 6)

    F = 10
    # Deterministic parameter init (PyTorch-style uniform fan-in bound).
    bound = 1.0 / jnp.sqrt(float(F))
    w1 = jax.random.uniform(k_w1, (F, F), jnp.float32, -bound, bound)
    b1 = jax.random.uniform(k_b1, (F,), jnp.float32, -bound, bound)
    w2 = jax.random.uniform(k_w2, (1, F), jnp.float32, -bound, bound)
    b2 = jax.random.uniform(k_b2, (1,), jnp.float32, -bound, bound)

    def ref(xs):
        return jax.nn.sigmoid(jnp.maximum(xs @ w1.T + b1, 0.0) @ w2.T + b2)

    # Small batch -> no-grid natural-layout kernel.
    x_small = jax.random.normal(k_x, (8, F), dtype=jnp.float32)
    out_small = jax.block_until_ready(toy_model_forward(x_small, w1, b1, w2, b2))
    assert out_small.shape == (8, 1)
    assert jnp.allclose(out_small, ref(x_small), atol=1e-5, rtol=1e-5)

    # Larger ragged batch -> tiled feature-major kernel (2 grid steps,
    # ragged/masked last tile, no pad, no output slice).
    x_big = jax.random.normal(k_x2, (3000, F), dtype=jnp.float32)
    out_big = jax.block_until_ready(toy_model_forward(x_big, w1, b1, w2, b2))
    assert out_big.shape == (3000, 1)
    assert jnp.allclose(out_big, ref(x_big), atol=1e-5, rtol=1e-5)

    print("KERNEL_OK")
</pallas_src>

<mosaic_0001>
module attributes {stable_mosaic.version = 11 : i64} {
  func.func @_toy_mlp_small_kernel(%arg0: memref<8x10xf32, #tpu.memory_space<vmem>>, %arg1: memref<10x10xf32, #tpu.memory_space<vmem>>, %arg2: memref<1x10xf32, #tpu.memory_space<vmem>>, %arg3: memref<1x10xf32, #tpu.memory_space<vmem>>, %arg4: memref<1x1xf32, #tpu.memory_space<vmem>>, %arg5: memref<8x1xf32, #tpu.memory_space<vmem>>) attributes {dimension_semantics = [], scalar_prefetch = 0 : i64, scratch_operands = 0 : i64, tpu.core_type = #tpu.core_type<tc>} {
    %c0 = arith.constant 0 : index
    %c0_0 = arith.constant 0 : index
    %0 = vector.load %arg0[%c0, %c0_0] : memref<8x10xf32, #tpu.memory_space<vmem>>, vector<8x10xf32>
    %c0_1 = arith.constant 0 : index
    %c0_2 = arith.constant 0 : index
    %1 = vector.load %arg1[%c0_1, %c0_2] : memref<10x10xf32, #tpu.memory_space<vmem>>, vector<10x10xf32>
    %cst = arith.constant dense<0.000000e+00> : vector<8x10xf32>
    %2 = tpu.matmul %0, %1, %cst {dimension_numbers = #tpu.dot_dimension_numbers<[1], [0], [0], [1], [0, 0, 1, 1], [], []>} : vector<8x10xf32>, vector<10x10xf32>, vector<8x10xf32> -> vector<8x10xf32>
    %c0_3 = arith.constant 0 : index
    %c0_4 = arith.constant 0 : index
    %3 = vector.load %arg2[%c0_3, %c0_4] : memref<1x10xf32, #tpu.memory_space<vmem>>, vector<1x10xf32>
    %4 = vector.broadcast %3 : vector<1x10xf32> to vector<8x10xf32>
    %5 = arith.addf %2, %4 : vector<8x10xf32>
    %cst_5 = arith.constant 0.000000e+00 : f32
    %6 = vector.broadcast %cst_5 : f32 to vector<8x10xf32>
    %7 = arith.maximumf %5, %6 : vector<8x10xf32>
    %c0_6 = arith.constant 0 : index
    %c0_7 = arith.constant 0 : index
    %8 = vector.load %arg3[%c0_6, %c0_7] : memref<1x10xf32, #tpu.memory_space<vmem>>, vector<1x10xf32>
    %9 = vector.broadcast %8 : vector<1x10xf32> to vector<8x10xf32>
    %10 = arith.mulf %7, %9 : vector<8x10xf32>
    %cst_8 = arith.constant dense<0.000000e+00> : vector<8xf32>
    %11 = vector.multi_reduction <add>, %10, %cst_8 [1] : vector<8x10xf32> to vector<8xf32>
    %12 = vector.shape_cast %11 : vector<8xf32> to vector<8x1xf32>
    %c0_9 = arith.constant 0 : index
    %c0_10 = arith.constant 0 : index
    %13 = vector.load %arg4[%c0_9, %c0_10] : memref<1x1xf32, #tpu.memory_space<vmem>>, vector<1x1xf32>
    %14 = vector.broadcast %13 : vector<1x1xf32> to vector<8x1xf32>
    %15 = arith.addf %12, %14 : vector<8x1xf32>
    %16 = arith.negf %15 : vector<8x1xf32>
    %17 = math.exp %16 : vector<8x1xf32>
    %cst_11 = arith.constant 1.000000e+00 : f32
    %18 = vector.broadcast %cst_11 : f32 to vector<8x1xf32>
    %19 = arith.addf %18, %17 : vector<8x1xf32>
    %20 = arith.divf %18, %19 : vector<8x1xf32>
    %c0_12 = arith.constant 0 : index
    %c0_13 = arith.constant 0 : index
    %21 = vector.load %arg5[%c0_12, %c0_13] : memref<8x1xf32, #tpu.memory_space<vmem>>, vector<8x1xf32>
    tpu.vector_store %arg5[%c0_12, %c0_13], %20 {strides = array<i32>} : memref<8x1xf32, #tpu.memory_space<vmem>>, vector<8x1xf32>,
    return
  }
}

</mosaic_0001>

<bundles_post_ra>
// kernel: tpu_custom_call.1
= control target key start
LH: loop header
LB: loop body
LE: loop exit
PB: predicated region body
PF: predicated region fallthrough
CT: control target
= control target key end

     0   :  { %s331_s0 = inlined_call_operand.hbm [shape: f32[8,10], index: 0, kind: input, shape index: {}]   ;;  %s332_s1 = inlined_call_operand.hbm [shape: f32[10,10], index: 1, kind: input, shape index: {}]   ;;  %s333_s2 = inlined_call_operand.vmem [shape: f32[1,10], index: 2, kind: input, shape index: {}]   ;;  %s334_s3 = inlined_call_operand.vmem [shape: f32[1,10], index: 3, kind: input, shape index: {}]   ;;  %s335_s4 = inlined_call_operand.<no memory space> [shape: f32[1,1], index: 4, kind: input, shape index: {}]   ;;  %s336_s5 = inlined_call_operand.vmem [shape: f32[8,1], index: 5, kind: output, shape index: {}]  }
   0x1   :  { %v10_v0 = vstv %s335_s4 }
   0x2   :  { %11 = vst [vmem:[#allocation2] sm:$0x1] %v10_v0 }
   0x3   :  { %12 = vsyncpa [#allocation4], 0 }
   0x4   :  { %13 = vsyncpa [#allocation6], 0  ;;  %s250_s20 = smov [#allocation3]   ;;  %s251_s22 = smov [#allocation5]  }
   0x5   :  { %s20_s21 = sshll.u32 %s250_s20, 4  ;;  %s29_s23 = sshll.u32 %s251_s22, 4  ;;  %s21_s21 = int_to_ptr.vmem [resolvable:$true] %s20_s21  ;;  %s291_s23 = int_to_ptr.vmem [resolvable:$true] %s29_s23 }
   0x6   :  { %s202_s26 = scalar_lea.hbm %s331_s0, 128 }
   0x7   :  { %p203_p0 = scmp.ne.s32.totalorder %s331_s0, %s202_s26  ;;  %p206_p1 = scmp.lt.u32.totalorder %s202_s26, %s331_s0 }
   0x9   :  { %p208_p2 = pnand %p206_p1, %p203_p0 }
   0xb   :  { %211 = shalt.err (!%p208_p2)
}
   0xc   :  { %s212_s30 = scalar_lea.vmem %s21_s21, 128  ;;  %p217_p4 = scmp.lt.s32.totalorder %s21_s21, %s21_s21 }
   0xd   :  { %p213_p3 = scmp.ne.s32.totalorder %s21_s21, %s212_s30  ;;  %p218_p5 = scmp.lt.s32.totalorder %s212_s30, %s212_s30 }
   0xf   :  { %p219_p6 = por %p218_p5, %p217_p4 }
  0x11   :  { %p220_p7 = pnand %p219_p6, %p213_p3 }
  0x13   :  { %223 = shalt.err (!%p220_p7)
}
  0x14   :  { %23 = dma.hbm_to_vmem [thread:$0]  %s331_s0, 128, %s21_s21, [#allocation4]  }
  0x15   :  { %s224_s10 = scalar_lea.hbm %s332_s1, 256 }
  0x16   :  { %p225_p8 = scmp.ne.s32.totalorder %s332_s1, %s224_s10  ;;  %p228_p9 = scmp.lt.u32.totalorder %s224_s10, %s332_s1 }
  0x18   :  { %p230_p10 = pnand %p228_p9, %p225_p8 }
  0x1a   :  { %233 = shalt.err (!%p230_p10)
}
  0x1b   :  { %s234_s15 = scalar_lea.vmem %s291_s23, 256  ;;  %p239_p12 = scmp.lt.s32.totalorder %s291_s23, %s291_s23 }
  0x1c   :  { %p235_p11 = scmp.ne.s32.totalorder %s291_s23, %s234_s15  ;;  %p240_p13 = scmp.lt.s32.totalorder %s234_s15, %s234_s15 }
  0x1e   :  { %p241_p0 = por %p240_p13, %p239_p12 }
  0x20   :  { %p242_p1 = pnand %p241_p0, %p235_p11 }
  0x22   :  { %245 = shalt.err (!%p242_p1)
}
  0x23   :  { %s252_s0 = smov 128   ;;  %s253_s16 = smov 8  }
  0x24   :  { %35 = dma.hbm_to_vmem [thread:$0]  %s332_s1, 256, %s291_s23, [#allocation6], %s252_s0, %s252_s0, %s253_s16  }
  0x25   :  { %246 = dma.done.wait [#allocation4], 128  }
  0x26   :  { %247 = vsyncadd [#allocation4], 4294967168 }
  0x27   :  { %248 = dma.done.wait [#allocation6], 256  }
  0x28   :  { %249 = vsyncadd [#allocation6], 4294967040  ;;  %v254_v1 = vmov 0.0|0.0   ;;  %vm255_vm0 = vmmov 0   ;;  %v256_v2 = vmov 0.0   ;;  %vm62_vm1 = vcmask 1041408  }
  0x29   :  { %186 = vmatprep.subr.bf16.mxu0 %v254_v1  ;;  %183 = vmatprep.mubr.msk.f32.mxu0 %vm255_vm0, %v256_v2  ;;  %v49_v3 = vld [vmem:[#allocation5] sm:$0xff]  ;;  %v50_v4 = vld [vmem:[#allocation5 + $0x8] sm:$0x3]  ;;  %vm257_vm2 = vmmov 1   ;;  %v48_v6 = vld [vmem:[#allocation3] sm:$0xff]  ;;  %vm58_vm4 = vcmask 80896  }
  0x2a   :  { %vm188_vm3 = vmpackc.low %vm62_vm1, %vm257_vm2  ;;  %v187_v5 = vpack.c.bf16 %v50_v4, %v49_v3  ;;  %v170_v7 = vld [vmem:[%s333_s2] ss:$0 sm:$0xff]  ;;  %vm162_vm5 = vcmask 7168  }
  0x2b   :  { %v173_v11 = vld [vmem:[%s334_s3] ss:$0 sm:$0xff] }
  0x2c   :  { %189 = vmatpush3.bf16.msk.msra.mxu0 %vm188_vm3, %v187_v5  ;;  %v174_v15 = vld [vmem:[#allocation2] ss:$0 sm:$0xff] }
  0x2f   :  { %184 = vmatmul.mubr.msk.f32.vlgmr.msra.gmra.mrb[0].mxu0 %vm58_vm4, %v48_v6 }
 0x102   :  { %v132_v8 = vpop.f32.mrb[0].mxu0 }
 0x103   :  { %v133_v9 = vadd.f32 %v170_v7, %v132_v8  ;;  %v185_v10 = vpop.f32.mrb[1].mxu0 }
 0x105   :  { %v136_v12 = vmax.f32 %v133_v9, 0.0 }
 0x107   :  { %v144_v13 = vmul.f32 %v173_v11, %v136_v12 }
 0x109   :  { %v145_v14 = vsel %vm58_vm4, %v144_v13, 0.0 }
 0x10a   :  { %146 = vadd.xlane.f32.xlu0 %v145_v14 }
 0x197   :  { %v147_v16 = vpop.xlane.xlu0 %146 }
 0x198   :  { %v155_v17 = vadd.f32 %v174_v15, %v147_v16 }
 0x19a   :  { %v175_v18 = vmul.f32 -1.442695, %v155_v17 }
 0x19c   :  { %198 = vpow2.f32 %v175_v18 }
 0x1a6   :  { %v199_v19 = vpop.eup %198 }
 0x1a7   :  { %v159_v20 = vadd.f32 1.0, %v199_v19 }
 0x1a9   :  { %200 = vrcp.f32 %v159_v20 }
 0x1b3   :  { %v201_v21 = vpop.eup %200 }
 0x1b4   :  { %163 = vst.msk [vmem:[%s336_s5] sm:$0xff] %vm162_vm5, %v201_v21 }
 0x1b5   :  { %168 = vsyncpa [#allocation4], 1 }
 0x1b6   :  { %169 = vsyncpa [#allocation6], 1 }

</bundles_post_ra>
